<compile_context>
chip_gen: v7x
topology: tpu7x:2x2x1
jax: 0.10.0
libtpu: 0.0.40
codegen_flags: <defaults>
</compile_context>

<pallas_src>
import functools
import math

import jax
import jax.numpy as jnp
from jax import lax
from jax.experimental import pallas as pl
from jax.experimental.pallas import tpu as pltpu

ACT_DTYPE = jnp.bfloat16          # activation / conv-weight streaming dtype
_VMEM_LIMIT = 32 * 1024 * 1024    # safe on v5e (128 MiB phys), v6e (128), v7x (64)


# ----------------------------------------------------------------------------
# Pallas kernels
# ----------------------------------------------------------------------------

def input_layer_kernel(z_ref, w_ref, b_ref, o_ref):
    """EqualConvTranspose2d(code, ch, 4, 1, 0) on a 1x1 input + PixelNorm + LeakyReLU(0.1).

    z: (B, Cin) f32, w: (16, Cin, Cout) f32, b: (1, Cout) f32, o: (16, B, Cout) bf16.
    One batched matmul + one full-block store.
    """
    s, _, cin = w_ref.shape
    B = z_ref.shape[0]
    z = jnp.broadcast_to(z_ref[...][None], (s, B, cin))
    y = jnp.einsum('sbc,scd->sbd', z, w_ref[...],
                   preferred_element_type=jnp.float32)        # (16, B, Cout)
    y = y + b_ref[...]
    # PixelNorm over channels (last dim), then LeakyReLU(0.1) -- all in f32.
    y = y * lax.rsqrt(jnp.mean(y * y, axis=-1, keepdims=True) + 1e-8)
    y = jnp.where(y >= 0.0, y, 0.1 * y)
    o_ref[...] = y.astype(o_ref.dtype)


def conv3x3_kernel(x_ref, w_ref, b_ref, o_ref, *, pixel_norm, leaky):
    """Fused 3x3 conv (padding=1) + bias + optional PixelNorm + LeakyReLU on one halo row tile.

    x: (1, 1, TH+2, W+2, Cin) bf16 halo tile, w: (9, Cin, Cout) bf16,
    b: (1, Cout) f32, o: (1, 1, TH*W, Cout) bf16.
    The 3x3 gather happens in VMEM (9 shifted slices), accumulation in f32.
    """
    _, _, thp2, wp2, cin = x_ref.shape
    th, w = thp2 - 2, wp2 - 2
    cout = o_ref.shape[-1]

    x = x_ref[0, 0]                                            # (TH+2, W+2, Cin)
    acc = jnp.zeros((th * w, cout), jnp.float32)
    for dy in range(3):                                        # static unroll: 9 MXU matmuls
        for dx in range(3):
            xs = x[dy:dy + th, dx:dx + w, :].reshape(th * w, cin)
            acc = acc + jnp.dot(xs, w_ref[dy * 3 + dx],
                                preferred_element_type=jnp.float32)

    y = acc + b_ref[...]
    if pixel_norm:
        y = y * lax.rsqrt(jnp.mean(y * y, axis=-1, keepdims=True) + 1e-8)
    if leaky:
        y = jnp.where(y >= 0.0, y, 0.1 * y)
    o_ref[0, 0] = y.astype(o_ref.dtype)


def rgb_blend_tanh_kernel(alpha_ref, x_ref, w_ref, b_ref, skip_ref, o_ref, *, use_tanh):
    """EqualConv2d(Cin, 3, 1) fused with the progressive-growing blend and tanh.

    out = tanh?((1 - alpha) * skip + alpha * (x @ w + b)); alpha is an SMEM scalar.
    x: (1, TN, Cin) bf16, w: (Cin, 3) bf16, b: (1, 3) f32, skip/o: (1, TN, 3) f32.
    """
    y = jnp.dot(x_ref[0], w_ref[...], preferred_element_type=jnp.float32) + b_ref[...]
    a = alpha_ref[0]
    y = (1.0 - a) * skip_ref[0] + a * y
    if use_tanh:
        y = jnp.tanh(y)
    o_ref[0] = y


# ----------------------------------------------------------------------------
# pallas_call wrappers
# ----------------------------------------------------------------------------

def _row_tile(H, W, target_rows=2048):
    """Row-tile height so each GEMM has ~target_rows spatial rows (>=512 hits ~85% HBM roofline)."""
    th = min(H, max(1, target_rows // W))
    while H % th:
        th -= 1
    return th


def _make_halo_tiles(x, th):
    """(B, H, W, C) -> (B, T, TH+2, W+2, C): zero-padded overlapping row tiles.

    Only the 2 halo rows per tile are duplicated (~(TH+2)/TH HBM inflation) instead of
    the 9x inflation of an im2col.
    """
    B, H, W, C = x.shape
    xp = jnp.pad(x, ((0, 0), (1, 1), (1, 1), (0, 0)))
    t = H // th
    rows = jnp.arange(t)[:, None] * th + jnp.arange(th + 2)[None, :]
    return xp[:, rows]                                         # (B, T, TH+2, W+2, C)


def input_layer(z, w, b):
    B, cin = z.shape
    cout = w.shape[-1]
    out = pl.pallas_call(
        input_layer_kernel,
        out_shape=jax.ShapeDtypeStruct((16, B, cout), ACT_DTYPE),
        grid=(1,),
        in_specs=[
            pl.BlockSpec((B, cin), lambda i: (0, 0)),
            pl.BlockSpec((16, cin, cout), lambda i: (0, 0, 0)),
            pl.BlockSpec((1, cout), lambda i: (0, 0)),
        ],
        out_specs=pl.BlockSpec((16, B, cout), lambda i: (0, 0, 0)),
        compiler_params=pltpu.CompilerParams(
            dimension_semantics=("arbitrary",),
            vmem_limit_bytes=_VMEM_LIMIT),
    )(z, w, b)
    # (16, B, Cout) -> (B, 4, 4, Cout)
    return jnp.transpose(out, (1, 0, 2)).reshape(B, 4, 4, cout)


def conv3x3(x, w, b, *, pixel_norm, leaky):
    B, H, W, Cin = x.shape
    Cout = w.shape[-1]
    th = _row_tile(H, W)
    t = H // th
    tiles = _make_halo_tiles(x, th)                            # (B, T, TH+2, W+2, Cin)

    flops = 2 * B * H * W * 9 * Cin * Cout
    bytes_accessed = (tiles.size * tiles.dtype.itemsize
                      + w.size * w.dtype.itemsize
                      + b.size * b.dtype.itemsize
                      + B * H * W * Cout * jnp.dtype(ACT_DTYPE).itemsize)

    out = pl.pallas_call(
        functools.partial(conv3x3_kernel, pixel_norm=pixel_norm, leaky=leaky),
        out_shape=jax.ShapeDtypeStruct((B, t, th * W, Cout), ACT_DTYPE),
        grid=(B, t),
        in_specs=[
            pl.BlockSpec((1, 1, th + 2, W + 2, Cin), lambda bb, tt: (bb, tt, 0, 0, 0)),
            pl.BlockSpec((9, Cin, Cout), lambda bb, tt: (0, 0, 0)),   # weights stay resident
            pl.BlockSpec((1, Cout), lambda bb, tt: (0, 0)),
        ],
        out_specs=pl.BlockSpec((1, 1, th * W, Cout), lambda bb, tt: (bb, tt, 0, 0)),
        compiler_params=pltpu.CompilerParams(
            dimension_semantics=("parallel", "parallel"),
            vmem_limit_bytes=_VMEM_LIMIT),
        cost_estimate=pl.CostEstimate(
            flops=int(flops),
            transcendentals=int(B * H * W if pixel_norm else 0),
            bytes_accessed=int(bytes_accessed)),
    )(tiles, w, b)
    return out.reshape(B, H, W, Cout)


def to_rgb_blend(x, w, b, skip, alpha, use_tanh):
    """Fused to_rgb + (1-alpha)*skip + alpha*rgb + optional tanh.  Returns (B, H, W, 3) f32."""
    B, H, W, Cin = x.shape
    th = _row_tile(H, W)
    t = H // th
    tn = th * W
    xf = x.reshape(B, H * W, Cin)
    skipf = skip.astype(jnp.float32).reshape(B, H * W, 3)
    alpha_arr = jnp.reshape(jnp.asarray(alpha, jnp.float32), (1,))   # SMEM scalar, no recompiles
    out = pl.pallas_call(
        functools.partial(rgb_blend_tanh_kernel, use_tanh=use_tanh),
        out_shape=jax.ShapeDtypeStruct((B, H * W, 3), jnp.float32),
        grid=(B, t),
        in_specs=[
            pl.BlockSpec(memory_space=pltpu.MemorySpace.SMEM),        # alpha
            pl.BlockSpec((1, tn, Cin), lambda bb, tt: (bb, tt, 0)),
            pl.BlockSpec((Cin, 3), lambda bb, tt: (0, 0)),
            pl.BlockSpec((1, 3), lambda bb, tt: (0, 0)),
            pl.BlockSpec((1, tn, 3), lambda bb, tt: (bb, tt, 0)),
        ],
        out_specs=pl.BlockSpec((1, tn, 3), lambda bb, tt: (bb, tt, 0)),
        compiler_params=pltpu.CompilerParams(
            dimension_semantics=("parallel", "parallel"),
            vmem_limit_bytes=_VMEM_LIMIT),
    )(alpha_arr, xf, w, b, skipf)
    return out.reshape(B, H, W, 3)


# ----------------------------------------------------------------------------
# plain-JAX glue (data movement only)
# ----------------------------------------------------------------------------

def _up1d(x, axis):
    """Bilinear x2 along one axis, matching F.interpolate(align_corners=False)."""
    n = x.shape[axis]
    idx = jnp.arange(n)
    xm1 = jnp.take(x, jnp.clip(idx - 1, 0, n - 1), axis=axis)
    xp1 = jnp.take(x, jnp.clip(idx + 1, 0, n - 1), axis=axis)
    even = 0.25 * xm1 + 0.75 * x
    odd = 0.75 * x + 0.25 * xp1
    stacked = jnp.stack([even, odd], axis=axis + 1)
    new_shape = list(x.shape)
    new_shape[axis] = 2 * n
    return stacked.reshape(new_shape)


def upsample2x(x):  # (B, H, W, C) bilinear x2, align_corners=False
    # TODO(synk): fuse this bilinear x2 into the following conv3x3 halo-tile load to
    # avoid the HBM round-trip of the 4x-larger upsampled activations.
    return _up1d(_up1d(x, 1), 2)


def nhwc_to_nchw(x):
    return jnp.transpose(x, (0, 3, 1, 2))


# ----------------------------------------------------------------------------
# Generator model (Pallas-backed)
# ----------------------------------------------------------------------------

def conv_block(x, p, pixel_norm=True):
    """ConvBlock: conv3x3 -> [PixelNorm] -> LeakyReLU -> conv3x3 -> [PixelNorm] -> LeakyReLU."""
    y = conv3x3(x, p['w1'], p['b1'], pixel_norm=pixel_norm, leaky=True)
    y = conv3x3(y, p['w2'], p['b2'], pixel_norm=pixel_norm, leaky=True)
    return y


def _output(feat_lo, feat_hi, rgb_lo_p, rgb_hi_p, alpha, use_tanh):
    B, H, W, _ = feat_hi.shape
    if 0 <= alpha < 1:
        zeros_lo = jnp.zeros((B, H // 2, W // 2, 3), jnp.float32)
        skip = upsample2x(to_rgb_blend(feat_lo, *rgb_lo_p, skip=zeros_lo,
                                       alpha=1.0, use_tanh=False))
        out = to_rgb_blend(feat_hi, *rgb_hi_p, skip=skip, alpha=alpha, use_tanh=use_tanh)
    else:
        zeros_hi = jnp.zeros((B, H, W, 3), jnp.float32)
        out = to_rgb_blend(feat_hi, *rgb_hi_p, skip=zeros_hi, alpha=1.0, use_tanh=use_tanh)
    return nhwc_to_nchw(out)


def generator_forward(params, z, step=0, alpha=-1.0, tanh=True, pixel_norm=True):
    step = min(step, 6)
    out4 = input_layer(z, params['input_w'], params['input_b'])        # (B,4,4,ch) bf16
    out4 = conv_block(out4, params['prog_4'], pixel_norm)
    out8 = conv_block(upsample2x(out4), params['prog_8'], pixel_norm)
    if step == 1:
        B, H, W, _ = out8.shape
        rgb = to_rgb_blend(out8, *params['rgb_8'],
                           skip=jnp.zeros((B, H, W, 3), jnp.float32),
                           alpha=1.0, use_tanh=tanh)
        return nhwc_to_nchw(rgb)
    out16 = conv_block(upsample2x(out8), params['prog_16'], pixel_norm)
    if step == 2:
        return _output(out8, out16, params['rgb_8'], params['rgb_16'], alpha, tanh)
    out32 = conv_block(upsample2x(out16), params['prog_32'], pixel_norm)
    if step == 3:
        return _output(out16, out32, params['rgb_16'], params['rgb_32'], alpha, tanh)
    out64 = conv_block(upsample2x(out32), params['prog_64'], pixel_norm)
    if step == 4:
        return _output(out32, out64, params['rgb_32'], params['rgb_64'], alpha, tanh)
    out128 = conv_block(upsample2x(out64), params['prog_128'], pixel_norm)
    if step == 5:
        return _output(out64, out128, params['rgb_64'], params['rgb_128'], alpha, tanh)
    out256 = conv_block(upsample2x(out128), params['prog_256'], pixel_norm)
    if step == 6:
        return _output(out128, out256, params['rgb_128'], params['rgb_256'], alpha, tanh)
    return None  # matches PyTorch: forward falls through for step == 0


# ----------------------------------------------------------------------------
# deterministic parameter initialization (mirrors __init__ + equal_lr scaling)
# ----------------------------------------------------------------------------

def _conv3x3_weight(key, cin, cout):
    # nn.Conv2d weight (cout, cin, 3, 3) ~ N(0,1); equal-lr scale sqrt(2 / (cin*9)).
    w = jax.random.normal(key, (cout, cin, 3, 3), jnp.float32) * math.sqrt(2.0 / (cin * 9))
    # -> (ky, kx, cin, cout) -> (9, cin, cout); matches in-kernel tap order (dy*3+dx).
    return jnp.transpose(w, (2, 3, 1, 0)).reshape(9, cin, cout).astype(ACT_DTYPE)


def _conv_block_params(key, cin, cout):
    k1, k2 = jax.random.split(key)
    return {
        'w1': _conv3x3_weight(k1, cin, cout),
        'b1': jnp.zeros((1, cout), jnp.float32),
        'w2': _conv3x3_weight(k2, cout, cout),
        'b2': jnp.zeros((1, cout), jnp.float32),
    }


def _to_rgb_params(key, cin):
    # nn.Conv2d weight (3, cin, 1, 1) ~ N(0,1); equal-lr scale sqrt(2 / cin).
    w = jax.random.normal(key, (3, cin), jnp.float32) * math.sqrt(2.0 / cin)
    return (jnp.transpose(w, (1, 0)).astype(ACT_DTYPE), jnp.zeros((1, 3), jnp.float32))


def init_generator_params(key, input_code_dim=128, in_channel=128):
    ks = jax.random.split(key, 16)
    ch = in_channel
    # ConvTranspose2d weight (code, ch, 4, 4) ~ N(0,1); equal-lr fan_in = ch*16.
    w_in = jax.random.normal(ks[0], (input_code_dim, ch, 4, 4), jnp.float32) \
        * math.sqrt(2.0 / (ch * 16))
    # -> (4, 4, code, ch) -> (16, code, ch): per-spatial-position matmul weights.
    w_in = jnp.transpose(w_in, (2, 3, 0, 1)).reshape(16, input_code_dim, ch)
    params = {
        'input_w': w_in,
        'input_b': jnp.zeros((1, ch), jnp.float32),
        'prog_4': _conv_block_params(ks[1], ch, ch),
        'prog_8': _conv_block_params(ks[2], ch, ch),
        'prog_16': _conv_block_params(ks[3], ch, ch),
        'prog_32': _conv_block_params(ks[4], ch, ch),
        'prog_64': _conv_block_params(ks[5], ch, ch // 2),
        'prog_128': _conv_block_params(ks[6], ch // 2, ch // 4),
        'prog_256': _conv_block_params(ks[7], ch // 4, ch // 4),
        'rgb_8': _to_rgb_params(ks[8], ch),
        'rgb_16': _to_rgb_params(ks[9], ch),
        'rgb_32': _to_rgb_params(ks[10], ch),
        'rgb_64': _to_rgb_params(ks[11], ch // 2),
        'rgb_128': _to_rgb_params(ks[12], ch // 4),
        'rgb_256': _to_rgb_params(ks[13], ch // 4),
    }
    return params


# ----------------------------------------------------------------------------
# main
# ----------------------------------------------------------------------------

if __name__ == "__main__":
    key = jax.random.PRNGKey(0)
    k_z, k_p = jax.random.split(key)

    B, code_dim, in_channel = 2, 32, 32   # small, consistent with Generator(input_code_dim, in_channel)
    params = init_generator_params(k_p, input_code_dim=code_dim, in_channel=in_channel)
    z = jax.random.normal(k_z, (B, code_dim), jnp.float32)

    # step=1 path (plain to_rgb + tanh), output is NCHW like PyTorch.
    out_step1 = generator_forward(params, z, step=1, alpha=-1.0, tanh=True)
    # step=2 path with alpha-blend of the upscaled low-res RGB.
    out_step2 = generator_forward(params, z, step=2, alpha=0.5, tanh=True)

    jax.block_until_ready((out_step1, out_step2))
    assert out_step1.shape == (B, 3, 8, 8), out_step1.shape
    assert out_step2.shape == (B, 3, 16, 16), out_step2.shape
    assert bool(jnp.all(jnp.isfinite(out_step1))) and bool(jnp.all(jnp.isfinite(out_step2)))
    print("KERNEL_OK")
</pallas_src>

<mosaic_0001>
module attributes {stable_mosaic.version = 11 : i64} {
  func.func @input_layer_kernel(%arg0: i32, %arg1: memref<2x32xf32, #tpu.memory_space<vmem>>, %arg2: memref<16x32x32xf32, #tpu.memory_space<vmem>>, %arg3: memref<1x32xf32, #tpu.memory_space<vmem>>, %arg4: memref<16x2x32xbf16, #tpu.memory_space<vmem>>) attributes {dimension_semantics = [#tpu.dimension_semantics<arbitrary>], iteration_bounds = array<i64: 1>, scalar_prefetch = 0 : i64, scratch_operands = 0 : i64, tpu.core_type = #tpu.core_type<tc>, window_params = [{pipeline_mode = #tpu.pipeline_mode<synchronous>, transform_indices = @transform_0, window_bounds = array<i64: 2, 32>}, {pipeline_mode = #tpu.pipeline_mode<synchronous>, transform_indices = @transform_1, window_bounds = array<i64: 16, 32, 32>}, {pipeline_mode = #tpu.pipeline_mode<synchronous>, transform_indices = @transform_2, window_bounds = array<i64: 1, 32>}, {pipeline_mode = #tpu.pipeline_mode<synchronous>, transform_indices = @transform_3, window_bounds = array<i64: 16, 2, 32>}]} {
    %c0 = arith.constant 0 : index
    %c0_0 = arith.constant 0 : index
    %0 = vector.load %arg1[%c0, %c0_0] : memref<2x32xf32, #tpu.memory_space<vmem>>, vector<2x32xf32>
    %1 = vector.shape_cast %0 : vector<2x32xf32> to vector<1x2x32xf32>
    %2 = vector.shape_cast %1 : vector<1x2x32xf32> to vector<1x2x32xf32>
    %3 = vector.broadcast %2 : vector<1x2x32xf32> to vector<16x2x32xf32>
    %c0_1 = arith.constant 0 : index
    %c0_2 = arith.constant 0 : index
    %c0_3 = arith.constant 0 : index
    %4 = vector.load %arg2[%c0_1, %c0_2, %c0_3] : memref<16x32x32xf32, #tpu.memory_space<vmem>>, vector<16x32x32xf32>
    "tpu.trace_start"() <{level = 10 : i32, message = "sbc,scd->sbd"}> : () -> ()
    %cst = arith.constant dense<0.000000e+00> : vector<16x2x32xf32>
    %5 = tpu.matmul %3, %4, %cst {dimension_numbers = #tpu.dot_dimension_numbers<[2], [1], [1], [2], [0, 0, 0, 1, 1, 2], [0], [0]>} : vector<16x2x32xf32>, vector<16x32x32xf32>, vector<16x2x32xf32> -> vector<16x2x32xf32>
    "tpu.trace_stop"() : () -> ()
    %c0_4 = arith.constant 0 : index
    %c0_5 = arith.constant 0 : index
    %6 = vector.load %arg3[%c0_4, %c0_5] : memref<1x32xf32, #tpu.memory_space<vmem>>, vector<1x32xf32>
    %7 = vector.shape_cast %6 : vector<1x32xf32> to vector<1x1x32xf32>
    %8 = vector.broadcast %7 : vector<1x1x32xf32> to vector<16x2x32xf32>
    %9 = arith.addf %5, %8 : vector<16x2x32xf32>
    %10 = arith.mulf %9, %9 : vector<16x2x32xf32>
    %cst_6 = arith.constant dense<0.000000e+00> : vector<16x2xf32>
    %11 = vector.multi_reduction <add>, %10, %cst_6 [2] : vector<16x2x32xf32> to vector<16x2xf32>
    %12 = vector.shape_cast %11 : vector<16x2xf32> to vector<16x2x1xf32>
    %cst_7 = arith.constant 3.200000e+01 : f32
    %13 = vector.broadcast %cst_7 : f32 to vector<16x2x1xf32>
    %14 = arith.divf %12, %13 : vector<16x2x1xf32>
    %cst_8 = arith.constant 9.99999993E-9 : f32
    %15 = vector.broadcast %cst_8 : f32 to vector<16x2x1xf32>
    %16 = arith.addf %14, %15 : vector<16x2x1xf32>
    %17 = math.rsqrt %16 : vector<16x2x1xf32>
    %18 = vector.broadcast %17 : vector<16x2x1xf32> to vector<16x2x32xf32>
    %19 = arith.mulf %9, %18 : vector<16x2x32xf32>
    %cst_9 = arith.constant 0.000000e+00 : f32
    %20 = vector.broadcast %cst_9 : f32 to vector<16x2x32xf32>
    %21 = arith.cmpf oge, %19, %20 : vector<16x2x32xf32>
    %cst_10 = arith.constant 1.000000e-01 : f32
    %22 = vector.broadcast %cst_10 : f32 to vector<16x2x32xf32>
    %23 = arith.mulf %22, %19 : vector<16x2x32xf32>
    %24 = arith.select %21, %19, %23 : vector<16x2x32xi1>, vector<16x2x32xf32>
    %25 = arith.truncf %24 : vector<16x2x32xf32> to vector<16x2x32xbf16>
    %c0_11 = arith.constant 0 : index
    %c0_12 = arith.constant 0 : index
    %c0_13 = arith.constant 0 : index
    %26 = vector.load %arg4[%c0_11, %c0_12, %c0_13] : memref<16x2x32xbf16, #tpu.memory_space<vmem>>, vector<16x2x32xbf16>
    tpu.vector_store %arg4[%c0_11, %c0_12, %c0_13], %25 {strides = array<i32>} : memref<16x2x32xbf16, #tpu.memory_space<vmem>>, vector<16x2x32xbf16>,
    return
  }
  func.func @transform_0(%arg0: i32) -> (i32, i32) {
    %c0_i32 = arith.constant 0 : i32
    %c0_i32_0 = arith.constant 0 : i32
    %c0_i32_1 = arith.constant 0 : i32
    return %c0_i32, %c0_i32_0 : i32, i32
  }
  func.func @transform_1(%arg0: i32) -> (i32, i32, i32) {
    %c0_i32 = arith.constant 0 : i32
    %c0_i32_0 = arith.constant 0 : i32
    %c0_i32_1 = arith.constant 0 : i32
    %c0_i32_2 = arith.constant 0 : i32
    return %c0_i32, %c0_i32_0, %c0_i32_1 : i32, i32, i32
  }
  func.func @transform_2(%arg0: i32) -> (i32, i32) {
    %c0_i32 = arith.constant 0 : i32
    %c0_i32_0 = arith.constant 0 : i32
    %c0_i32_1 = arith.constant 0 : i32
    return %c0_i32, %c0_i32_0 : i32, i32
  }
  func.func @transform_3(%arg0: i32) -> (i32, i32, i32) {
    %c0_i32 = arith.constant 0 : i32
    %c0_i32_0 = arith.constant 0 : i32
    %c0_i32_1 = arith.constant 0 : i32
    %c0_i32_2 = arith.constant 0 : i32
    return %c0_i32, %c0_i32_0, %c0_i32_1 : i32, i32, i32
  }
}

</mosaic_0001>

<bundles_post_ra>
// kernel: tpu_custom_call.1
= control target key start
LH: loop header
LB: loop body
LE: loop exit
PB: predicated region body
PF: predicated region fallthrough
CT: control target
= control target key end

     0   :  { %8 = vsyncpa [#allocation3], 0  ;;  %s2253_s0 = inlined_call_operand.hbm [shape: f32[2,32], index: 0, kind: input, shape index: {}]   ;;  %s2254_s1 = inlined_call_operand.hbm [shape: f32[16,32,32], index: 1, kind: input, shape index: {}]   ;;  %s2255_s2 = inlined_call_operand.vmem [shape: f32[1,32], index: 2, kind: input, shape index: {}]   ;;  %s2256_s3 = inlined_call_operand.hbm [shape: bf16[16,2,32], index: 3, kind: output, shape index: {}]  }
   0x1   :  { %9 = vsyncpa [#allocation6], 0 }
   0x2   :  { %10 = vsyncpa [#allocation4], 0  ;;  %s1949_s12 = smov [#allocation2]   ;;  %s1950_s14 = smov [#allocation5]  }
   0x3   :  { %s17_s13 = sshll.u32 %s1949_s12, 4  ;;  %s26_s15 = sshll.u32 %s1950_s14, 4  ;;  %s18_s13 = int_to_ptr.vmem [resolvable:$true] %s17_s13  ;;  %s1979_s15 = int_to_ptr.vmem [resolvable:$true] %s26_s15 }
   0x4   :  { %s1877_s18 = scalar_lea.hbm %s2253_s0, 32 }
   0x5   :  { %p1878_p0 = scmp.ne.s32.totalorder %s2253_s0, %s1877_s18  ;;  %p1881_p1 = scmp.lt.u32.totalorder %s1877_s18, %s2253_s0 }
   0x7   :  { %p1883_p2 = pnand %p1881_p1, %p1878_p0 }
   0x9   :  { %1886 = shalt.err (!%p1883_p2)
}
   0xa   :  { %s1887_s23 = scalar_lea.vmem %s18_s13, 32  ;;  %p1892_p4 = scmp.lt.s32.totalorder %s18_s13, %s18_s13 }
   0xb   :  { %p1888_p3 = scmp.ne.s32.totalorder %s18_s13, %s1887_s23  ;;  %p1893_p5 = scmp.lt.s32.totalorder %s1887_s23, %s1887_s23 }
   0xd   :  { %p1894_p6 = por %p1893_p5, %p1892_p4 }
   0xf   :  { %p1895_p7 = pnand %p1894_p6, %p1888_p3 }
  0x11   :  { %1898 = shalt.err (!%p1895_p7)
}
  0x12   :  { %20 = dma.hbm_to_vmem [thread:$0]  %s2253_s0, 32, %s18_s13, [#allocation3]  }
  0x13   :  { %s1899_s28 = scalar_lea.hbm %s2254_s1, 8192 }
  0x14   :  { %p1900_p8 = scmp.ne.s32.totalorder %s2254_s1, %s1899_s28  ;;  %p1903_p9 = scmp.lt.u32.totalorder %s1899_s28, %s2254_s1 }
  0x16   :  { %p1905_p10 = pnand %p1903_p9, %p1900_p8 }
  0x18   :  { %1908 = shalt.err (!%p1905_p10)
}
  0x19   :  { %s1909_s6 = scalar_lea.vmem %s1979_s15, 8192  ;;  %p1914_p12 = scmp.lt.s32.totalorder %s1979_s15, %s1979_s15 }
  0x1a   :  { %p1910_p11 = scmp.ne.s32.totalorder %s1979_s15, %s1909_s6  ;;  %p1915_p13 = scmp.lt.s32.totalorder %s1909_s6, %s1909_s6 }
  0x1c   :  { %p1916_p0 = por %p1915_p13, %p1914_p12 }
  0x1e   :  { %p1917_p1 = pnand %p1916_p0, %p1910_p11 }
  0x20   :  { %1920 = shalt.err (!%p1917_p1)
}
  0x21   :  { %s1951_s0 = smov 128   ;;  %s1952_s7 = smov 8  }
  0x22   :  { %32 = dma.hbm_to_vmem [thread:$0]  %s2254_s1, 8192, %s1979_s15, [#allocation6], %s1951_s0, %s1951_s0, %s1952_s7  }
  0x23   :  { %1943 = dma.done.wait [#allocation3], 32  }
  0x24   :  { %1944 = vsyncadd [#allocation3], 4294967264 }
  0x25   :  { %1945 = dma.done.wait [#allocation6], 8192  }
  0x26   :  { %1946 = vsyncadd [#allocation6], 4294959104  ;;  %v1953_v0 = vmov 0.0|0.0   ;;  %vm1954_vm0 = vmmov 0   ;;  %v1955_v1 = vmov 0.0   ;;  %v42_v2 = vld [vmem:[#allocation5] sm:$0xff] }
  0x27   :  { %1739 = vmatprep.subr.bf16.mxu0 %v1953_v0  ;;  %1745 = vmatprep.subr.bf16.mxu1 %v1953_v0  ;;  %v43_v3 = vld [vmem:[#allocation5 + $0x8] sm:$0xff]  ;;  %v46_v4 = vld [vmem:[#allocation5 + $0x20] sm:$0xff]  ;;  %v44_v7 = vld [vmem:[#allocation5 + $0x10] sm:$0xff]  ;;  %vm113_vm1 = vcmask 261120   ;;  %vm1253_vm2 = vcmask 254976   ;;  %vm1431_vm4 = vcmask 253952  }
  0x28   :  { %1571 = vmatprep.mubr.msk.f32.mxu0 %vm1954_vm0, %v1955_v1  ;;  %1582 = vmatprep.mubr.msk.f32.mxu1 %vm1954_vm0, %v1955_v1  ;;  %v1740_v5 = vpack.c.bf16 %v43_v3, %v42_v2  ;;  %v47_v6 = vld [vmem:[#allocation5 + $0x28] sm:$0xff]  ;;  %v45_v8 = vld [vmem:[#allocation5 + $0x18] sm:$0xff]  ;;  %v48_v10 = vld [vmem:[#allocation5 + $0x30] sm:$0xff] }
  0x29   :  { %v1746_v9 = vpack.c.bf16 %v47_v6, %v46_v4  ;;  %v49_v11 = vld [vmem:[#allocation5 + $0x38] sm:$0xff]  ;;  %v1743_v12 = vpack.c.bf16 %v45_v8, %v44_v7  ;;  %v50_v14 = vld [vmem:[#allocation5 + $0x40] sm:$0xff]  ;;  %v51_v15 = vld [vmem:[#allocation5 + $0x48] sm:$0xff] }
  0x2a   :  { %1741 = vmatpush3.bf16.msra.mxu0 %v1740_v5  ;;  %v1749_v13 = vpack.c.bf16 %v49_v11, %v48_v10  ;;  %v54_v16 = vld [vmem:[#allocation5 + $0x60] sm:$0xff]  ;;  %v55_v17 = vld [vmem:[#allocation5 + $0x68] sm:$0xff]  ;;  %v2018_v18 = vld [vmem:[#allocation2] sm:$0x3]  ;;  %v1752_v19 = vpack.c.bf16 %v51_v15, %v50_v14 }
  0x2b   :  { %1747 = vmatpush3.bf16.msra.mxu1 %v1746_v9  ;;  %1742 = vmatprep.subr.bf16.mxu0 %v1953_v0  ;;  %v1758_v20 = vpack.c.bf16 %v55_v17, %v54_v16  ;;  %v52_v21 = vld [vmem:[#allocation5 + $0x50] sm:$0xff]  ;;  %v53_v22 = vld [vmem:[#allocation5 + $0x58] sm:$0xff]  ;;  %v58_v27 = vld [vmem:[#allocation5 + $0x80] sm:$0xff] }
  0x2c   :  { %1748 = vmatprep.subr.bf16.mxu1 %v1953_v0  ;;  %v56_v23 = vld [vmem:[#allocation5 + $0x70] sm:$0xff]  ;;  %v57_v24 = vld [vmem:[#allocation5 + $0x78] sm:$0xff]  ;;  %v1755_v25 = vpack.c.bf16 %v53_v22, %v52_v21  ;;  %v59_v28 = vld [vmem:[#allocation5 + $0x88] sm:$0xff] }
  0x2d   :  { %v1761_v26 = vpack.c.bf16 %v57_v24, %v56_v23  ;;  %v62_v29 = vld [vmem:[#allocation5 + $0xa0] sm:$0xff]  ;;  %v63_v30 = vld [vmem:[#allocation5 + $0xa8] sm:$0xff]  ;;  %v1764_v31 = vpack.c.bf16 %v59_v28, %v58_v27  ;;  %v60_v33 = vld [vmem:[#allocation5 + $0x90] sm:$0xff] }
  0x2e   :  { %1744 = vmatpush3.bf16.msra.mxu0 %v1743_v12  ;;  %v1770_v32 = vpack.c.bf16 %v63_v30, %v62_v29  ;;  %v61_v34 = vld [vmem:[#allocation5 + $0x98] sm:$0xff]  ;;  %v64_v35 = vld [vmem:[#allocation5 + $0xb0] sm:$0xff]  ;;  %v66_v39 = vld [vmem:[#allocation5 + $0xc0] sm:$0xff] }
  0x2f   :  { %1750 = vmatpush3.bf16.msra.mxu1 %v1749_v13  ;;  %1751 = vmatprep.subr.bf16.mxu0 %v1953_v0  ;;  %v65_v36 = vld [vmem:[#allocation5 + $0xb8] sm:$0xff]  ;;  %v1767_v37 = vpack.c.bf16 %v61_v34, %v60_v33  ;;  %v67_v40 = vld [vmem:[#allocation5 + $0xc8] sm:$0xff]  ;;  %v70_v41 = vld [vmem:[#allocation5 + $0xe0] sm:$0xff] }
  0x30   :  { %1757 = vmatprep.subr.bf16.mxu1 %v1953_v0  ;;  %v1773_v38 = vpack.c.bf16 %v65_v36, %v64_v35  ;;  %v71_v42 = vld [vmem:[#allocation5 + $0xe8] sm:$0xff]  ;;  %v1776_v43 = vpack.c.bf16 %v67_v40, %v66_v39  ;;  %v68_v45 = vld [vmem:[#allocation5 + $0xd0] sm:$0xff]  ;;  %v69_v46 = vld [vmem:[#allocation5 + $0xd8] sm:$0xff] }
  0x31   :  { %1572 = vmatmul.mubr.msk.f32.vlgmr.msra.gmra.mrb[0].mxu0 %vm113_vm1, %v2018_v18  ;;  %v1782_v44 = vpack.c.bf16 %v71_v42, %v70_v41  ;;  %v72_v47 = vld [vmem:[#allocation5 + $0xf0] sm:$0xff]  ;;  %v73_v48 = vld [vmem:[#allocation5 + $0xf8] sm:$0xff]  ;;  %v1779_v49 = vpack.c.bf16 %v69_v46, %v68_v45  ;;  %v74_v51 = vld [vmem:[#allocation5 + $0x100] sm:$0xff] }
  0x32   :  { %1583 = vmatmul.mubr.msk.f32.vlgmr.msra.gmra.mrb[0].mxu1 %vm113_vm1, %v2018_v18  ;;  %1753 = vmatpush3.bf16.msra.mxu0 %v1752_v19  ;;  %v1785_v50 = vpack.c.bf16 %v73_v48, %v72_v47  ;;  %v75_v52 = vld [vmem:[#allocation5 + $0x108] sm:$0xff]  ;;  %v78_v53 = vld [vmem:[#allocation5 + $0x120] sm:$0xff]  ;;  %v76_v57 = vld [vmem:[#allocation5 + $0x110] sm:$0xff] }
  0x33   :  { %1759 = vmatpush3.bf16.msra.mxu1 %v1758_v20  ;;  %1754 = vmatprep.subr.bf16.mxu0 %v1953_v0  ;;  %v79_v54 = vld [vmem:[#allocation5 + $0x128] sm:$0xff]  ;;  %v1788_v55 = vpack.c.bf16 %v75_v52, %v74_v51  ;;  %v77_v58 = vld [vmem:[#allocation5 + $0x118] sm:$0xff]  ;;  %v80_v59 = vld [vmem:[#allocation5 + $0x130] sm:$0xff] }
  0x34   :  { %1760 = vmatprep.subr.bf16.mxu1 %v1953_v0  ;;  %1593 = vmatprep.mubr.msk.f32.mxu0 %vm1954_vm0, %v1955_v1  ;;  %v1794_v56 = vpack.c.bf16 %v79_v54, %v78_v53  ;;  %v81_v60 = vld [vmem:[#allocation5 + $0x138] sm:$0xff]  ;;  %v1791_v61 = vpack.c.bf16 %v77_v58, %v76_v57  ;;  %v82_v63 = vld [vmem:[#allocation5 + $0x140] sm:$0xff]  ;;  %v83_v2 = vld [vmem:[#allocation5 + $0x148] sm:$0xff] }
  0x35   :  { %1604 = vmatprep.mubr.msk.f32.mxu1 %vm1954_vm0, %v1955_v1  ;;  %v1797_v62 = vpack.c.bf16 %v81_v60, %v80_v59  ;;  %v86_v3 = vld [vmem:[#allocation5 + $0x160] sm:$0xff]  ;;  %v87_v4 = vld [vmem:[#allocation5 + $0x168] sm:$0xff]  ;;  %v1800_v5 = vpack.c.bf16 %v83_v2, %v82_v63  ;;  %v84_v7 = vld [vmem:[#allocation5 + $0x150] sm:$0xff] }
  0x36   :  { %1756 = vmatpush3.bf16.msra.mxu0 %v1755_v25  ;;  %v1806_v6 = vpack.c.bf16 %v87_v4, %v86_v3  ;;  %v85_v8 = vld [vmem:[#allocation5 + $0x158] sm:$0xff]  ;;  %v88_v9 = vld [vmem:[#allocation5 + $0x170] sm:$0xff]  ;;  %v90_v13 = vld [vmem:[#allocation5 + $0x180] sm:$0xff] }
  0x37   :  { %1762 = vmatpush3.bf16.msra.mxu1 %v1761_v26  ;;  %1763 = vmatprep.subr.bf16.mxu0 %v1953_v0  ;;  %v89_v10 = vld [vmem:[#allocation5 + $0x178] sm:$0xff]  ;;  %v1803_v11 = vpack.c.bf16 %v85_v8, %v84_v7  ;;  %v91_v14 = vld [vmem:[#allocation5 + $0x188] sm:$0xff]  ;;  %v94_v15 = vld [vmem:[#allocation5 + $0x1a0] sm:$0xff] }
  0x38   :  { %1769 = vmatprep.subr.bf16.mxu1 %v1953_v0  ;;  %v1809_v12 = vpack.c.bf16 %v89_v10, %v88_v9  ;;  %v95_v16 = vld [vmem:[#allocation5 + $0x1a8] sm:$0xff]  ;;  %v1812_v17 = vpack.c.bf16 %v91_v14, %v90_v13  ;;  %v92_v20 = vld [vmem:[#allocation5 + $0x190] sm:$0xff]  ;;  %v93_v21 = vld [vmem:[#allocation5 + $0x198] sm:$0xff] }
  0x39   :  { %1594 = vmatmul.mubr.msk.f32.vlgmr.msra.gmra.mrb[2].mxu0 %vm113_vm1, %v2018_v18  ;;  %v1818_v19 = vpack.c.bf16 %v95_v16, %v94_v15  ;;  %v96_v22 = vld [vmem:[#allocation5 + $0x1b0] sm:$0xff]  ;;  %v97_v23 = vld [vmem:[#allocation5 + $0x1b8] sm:$0xff]  ;;  %v1815_v24 = vpack.c.bf16 %v93_v21, %v92_v20  ;;  %v98_v26 = vld [vmem:[#allocation5 + $0x1c0] sm:$0xff] }
  0x3a   :  { %1605 = vmatmul.mubr.msk.f32.vlgmr.msra.gmra.mrb[2].mxu1 %vm113_vm1, %v2018_v18  ;;  %1765 = vmatpush3.bf16.msra.mxu0 %v1764_v31  ;;  %v1821_v25 = vpack.c.bf16 %v97_v23, %v96_v22  ;;  %v99_v27 = vld [vmem:[#allocation5 + $0x1c8] sm:$0xff]  ;;  %v102_v28 = vld [vmem:[#allocation5 + $0x1e0] sm:$0xff]  ;;  %v101_v33 = vld [vmem:[#allocation5 + $0x1d8] sm:$0xff] }
  0x3b   :  { %1771 = vmatpush3.bf16.msra.mxu1 %v1770_v32  ;;  %1766 = vmatprep.subr.bf16.mxu0 %v1953_v0  ;;  %v103_v29 = vld [vmem:[#allocation5 + $0x1e8] sm:$0xff]  ;;  %v1824_v30 = vpack.c.bf16 %v99_v27, %v98_v26  ;;  %v100_v32 = vld [vmem:[#allocation5 + $0x1d0] sm:$0xff]  ;;  %v105_v35 = vld [vmem:[#allocation5 + $0x1f8] sm:$0xff] }
  0x3c   :  { %1772 = vmatprep.subr.bf16.mxu1 %v1953_v0  ;;  %1615 = vmatprep.mubr.msk.f32.mxu0 %vm1954_vm0, %v1955_v1  ;;  %v1830_v31 = vpack.c.bf16 %v103_v29, %v102_v28  ;;  %v104_v34 = vld [vmem:[#allocation5 + $0x1f0] sm:$0xff]  ;;  %v1827_v36 = vpack.c.bf16 %v101_v33, %v100_v32 }
  0x3d   :  { %1626 = vmatprep.mubr.msk.f32.mxu1 %vm1954_vm0, %v1955_v1 }
  0x3e   :  { %1768 = vmatpush3.bf16.msra.mxu0 %v1767_v37  ;;  %v1833_v37 = vpack.c.bf16 %v105_v35, %v104_v34 }
  0x3f   :  { %1774 = vmatpush3.bf16.msra.mxu1 %v1773_v38  ;;  %1775 = vmatprep.subr.bf16.mxu0 %v1953_v0  ;;  %v2111_v38 = vld [vmem:[%s2255_s2] ss:$0 sm:$0xff]  ;;  %s1956_s2 = smov [#allocation7]  }
  0x40   :  { %1781 = vmatprep.subr.bf16.mxu1 %v1953_v0  ;;  %s1453_s11 = sshll.u32 %s1956_s2, 4  ;;  %s1454_s11 = int_to_ptr.vmem [resolvable:$true] %s1453_s11 }
  0x41   :  { %1616 = vmatmul.mubr.msk.f32.vlgmr.msra.gmra.mrb[4].mxu0 %vm113_vm1, %v2018_v18  ;;  %s1921_s12 = scalar_lea.vmem %s1454_s11, 256  ;;  %p1926_p3 = scmp.lt.s32.totalorder %s1454_s11, %s1454_s11 }
  0x42   :  { %1627 = vmatmul.mubr.msk.f32.vlgmr.msra.gmra.mrb[4].mxu1 %vm113_vm1, %v2018_v18  ;;  %1777 = vmatpush3.bf16.msra.mxu0 %v1776_v43  ;;  %p1922_p2 = scmp.ne.s32.totalorder %s1454_s11, %s1921_s12  ;;  %p1927_p4 = scmp.lt.s32.totalorder %s1921_s12, %s1921_s12 }
  0x43   :  { %1783 = vmatpush3.bf16.msra.mxu1 %v1782_v44  ;;  %1778 = vmatprep.subr.bf16.mxu0 %v1953_v0 }
  0x44   :  { %1784 = vmatprep.subr.bf16.mxu1 %v1953_v0  ;;  %1637 = vmatprep.mubr.msk.f32.mxu0 %vm1954_vm0, %v1955_v1  ;;  %p1928_p5 = por %p1927_p4, %p1926_p3 }
  0x45   :  { %1648 = vmatprep.mubr.msk.f32.mxu1 %vm1954_vm0, %v1955_v1 }
  0x46   :  { %1780 = vmatpush3.bf16.msra.mxu0 %v1779_v49  ;;  %p1929_p6 = pnand %p1928_p5, %p1922_p2 }
  0x47   :  { %1786 = vmatpush3.bf16.msra.mxu1 %v1785_v50  ;;  %1787 = vmatprep.subr.bf16.mxu0 %v1953_v0 }
  0x48   :  { %1793 = vmatprep.subr.bf16.mxu1 %v1953_v0 }
  0x49   :  { %1638 = vmatmul.mubr.msk.f32.vlgmr.msra.gmra.mrb[6].mxu0 %vm113_vm1, %v2018_v18 }
  0x4a   :  { %1649 = vmatmul.mubr.msk.f32.vlgmr.msra.gmra.mrb[6].mxu1 %vm113_vm1, %v2018_v18  ;;  %1789 = vmatpush3.bf16.msra.mxu0 %v1788_v55 }
  0x4b   :  { %1795 = vmatpush3.bf16.msra.mxu1 %v1794_v56  ;;  %1790 = vmatprep.subr.bf16.mxu0 %v1953_v0 }
  0x4c   :  { %1796 = vmatprep.subr.bf16.mxu1 %v1953_v0  ;;  %1659 = vmatprep.mubr.msk.f32.mxu0 %vm1954_vm0, %v1955_v1 }
  0x4d   :  { %1670 = vmatprep.mubr.msk.f32.mxu1 %vm1954_vm0, %v1955_v1 }
  0x4e   :  { %1792 = vmatpush3.bf16.msra.mxu0 %v1791_v61 }
  0x4f   :  { %1798 = vmatpush3.bf16.msra.mxu1 %v1797_v62  ;;  %1799 = vmatprep.subr.bf16.mxu0 %v1953_v0 }
  0x50   :  { %1805 = vmatprep.subr.bf16.mxu1 %v1953_v0 }
  0x51   :  { %1660 = vmatmul.mubr.msk.f32.vlgmr.msra.gmra.mrb[8].mxu0 %vm113_vm1, %v2018_v18 }
  0x52   :  { %1671 = vmatmul.mubr.msk.f32.vlgmr.msra.gmra.mrb[8].mxu1 %vm113_vm1, %v2018_v18  ;;  %1801 = vmatpush3.bf16.msra.mxu0 %v1800_v5 }
  0x53   :  { %1807 = vmatpush3.bf16.msra.mxu1 %v1806_v6  ;;  %1802 = vmatprep.subr.bf16.mxu0 %v1953_v0 }
  0x54   :  { %1808 = vmatprep.subr.bf16.mxu1 %v1953_v0  ;;  %1681 = vmatprep.mubr.msk.f32.mxu0 %vm1954_vm0, %v1955_v1 }
  0x55   :  { %1692 = vmatprep.mubr.msk.f32.mxu1 %vm1954_vm0, %v1955_v1 }
  0x56   :  { %1804 = vmatpush3.bf16.msra.mxu0 %v1803_v11 }
  0x57   :  { %1810 = vmatpush3.bf16.msra.mxu1 %v1809_v12  ;;  %1811 = vmatprep.subr.bf16.mxu0 %v1953_v0 }
  0x58   :  { %1817 = vmatprep.subr.bf16.mxu1 %v1953_v0 }
  0x59   :  { %1682 = vmatmul.mubr.msk.f32.vlgmr.msra.gmra.mrb[10].mxu0 %vm113_vm1, %v2018_v18 }
  0x5a   :  { %1693 = vmatmul.mubr.msk.f32.vlgmr.msra.gmra.mrb[10].mxu1 %vm113_vm1, %v2018_v18  ;;  %1813 = vmatpush3.bf16.msra.mxu0 %v1812_v17 }
  0x5b   :  { %1819 = vmatpush3.bf16.msra.mxu1 %v1818_v19  ;;  %1814 = vmatprep.subr.bf16.mxu0 %v1953_v0 }
  0x5c   :  { %1820 = vmatprep.subr.bf16.mxu1 %v1953_v0  ;;  %1703 = vmatprep.mubr.msk.f32.mxu0 %vm1954_vm0, %v1955_v1 }
  0x5d   :  { %1714 = vmatprep.mubr.msk.f32.mxu1 %vm1954_vm0, %v1955_v1 }
  0x5e   :  { %1816 = vmatpush3.bf16.msra.mxu0 %v1815_v24 }
  0x5f   :  { %1822 = vmatpush3.bf16.msra.mxu1 %v1821_v25  ;;  %1823 = vmatprep.subr.bf16.mxu0 %v1953_v0 }
  0x60   :  { %1829 = vmatprep.subr.bf16.mxu1 %v1953_v0 }
  0x61   :  { %1704 = vmatmul.mubr.msk.f32.vlgmr.msra.gmra.mrb[12].mxu0 %vm113_vm1, %v2018_v18 }
  0x62   :  { %1715 = vmatmul.mubr.msk.f32.vlgmr.msra.gmra.mrb[12].mxu1 %vm113_vm1, %v2018_v18  ;;  %1825 = vmatpush3.bf16.msra.mxu0 %v1824_v30 }
  0x63   :  { %1831 = vmatpush3.bf16.msra.mxu1 %v1830_v31  ;;  %1826 = vmatprep.subr.bf16.mxu0 %v1953_v0 }
  0x64   :  { %1832 = vmatprep.subr.bf16.mxu1 %v1953_v0  ;;  %1725 = vmatprep.mubr.msk.f32.mxu0 %vm1954_vm0, %v1955_v1 }
  0x65   :  { %1736 = vmatprep.mubr.msk.f32.mxu1 %vm1954_vm0, %v1955_v1 }
  0x66   :  { %1828 = vmatpush3.bf16.msra.mxu0 %v1827_v36 }
  0x67   :  { %1834 = vmatpush3.bf16.msra.mxu1 %v1833_v37 }
  0x69   :  { %1726 = vmatmul.mubr.msk.f32.vlgmr.msra.gmra.mrb[14].mxu0 %vm113_vm1, %v2018_v18 }
  0x6a   :  { %1737 = vmatmul.mubr.msk.f32.vlgmr.msra.gmra.mrb[14].mxu1 %vm113_vm1, %v2018_v18 }
 0x104   :  { %v183_v0 = vpop.f32.mrb[0].mxu0 }
 0x105   :  { %v2114_v39 = vadd.f32 %v2111_v38, %v183_v0  ;;  %v253_v40 = vpop.f32.mrb[0].mxu1  ;;  %v1573_v41 = vpop.f32.mrb[1].mxu0 }
 0x106   :  { %v2117_v1 = vadd.f32 %v2111_v38, %v253_v40  ;;  %v1584_v42 = vpop.f32.mrb[1].mxu1 }
 0x107   :  { %v1237_v43 = vmul.f32 %v2114_v39, %v2114_v39 }
 0x108   :  { %v1238_v44 = vmul.f32 %v2117_v1, %v2117_v1 }
 0x109   :  { %v1254_v18 = vsel %vm1253_vm2, %v1237_v43, 0.0 }
 0x10a   :  { %1255 = vadd.xlane.f32.xlu0 %v1254_v18  ;;  %v1257_v49 = vsel %vm1253_vm2, %v1238_v44, 0.0 }
 0x10c   :  { %v323_v45 = vpop.f32.mrb[2].mxu0 }
 0x10d   :  { %v2125_v46 = vadd.f32 %v2111_v38, %v323_v45  ;;  %v393_v47 = vpop.f32.mrb[2].mxu1  ;;  %v1595_v48 = vpop.f32.mrb[3].mxu0 }
 0x10e   :  { %v2129_v50 = vadd.f32 %v2111_v38, %v393_v47  ;;  %v1606_v51 = vpop.f32.mrb[3].mxu1  ;;  %1258 = vadd.xlane.f32.xlu0 %v1257_v49 }
 0x10f   :  { %v1239_v52 = vmul.f32 %v2125_v46, %v2125_v46 }
 0x110   :  { %v1240_v54 = vmul.f32 %v2129_v50, %v2129_v50 }
 0x111   :  { %v1260_v53 = vsel %vm1253_vm2, %v1239_v52, 0.0 }
 0x112   :  { %1261 = vadd.xlane.f32.xlu1 %v1260_v53  ;;  %v1263_v59 = vsel %vm1253_vm2, %v1240_v54, 0.0 }
 0x114   :  { %v463_v55 = vpop.f32.mrb[4].mxu0 }
 0x115   :  { %v2137_v56 = vadd.f32 %v2111_v38, %v463_v55  ;;  %v533_v57 = vpop.f32.mrb[4].mxu1  ;;  %v1617_v58 = vpop.f32.mrb[5].mxu0 }
 0x116   :  { %v2141_v60 = vadd.f32 %v2111_v38, %v533_v57  ;;  %v1628_v61 = vpop.f32.mrb[5].mxu1  ;;  %1264 = vadd.xlane.f32.xlu1 %v1263_v59 }
 0x117   :  { %v1241_v62 = vmul.f32 %v2137_v56, %v2137_v56 }
 0x118   :  { %v1242_v63 = vmul.f32 %v2141_v60, %v2141_v60 }
 0x119   :  { %v1266_v2 = vsel %vm1253_vm2, %v1241_v62, 0.0 }
 0x11a   :  { %v1269_v3 = vsel %vm1253_vm2, %v1242_v63, 0.0  ;;  %1267 = vadd.xlane.f32.xlu0 %v1266_v2 }
 0x11b   :  { %1270 = vadd.xlane.f32.xlu1 %v1269_v3 }
 0x11c   :  { %v603_v4 = vpop.f32.mrb[6].mxu0 }
 0x11d   :  { %v2150_v5 = vadd.f32 %v2111_v38, %v603_v4  ;;  %v673_v6 = vpop.f32.mrb[6].mxu1  ;;  %v1639_v7 = vpop.f32.mrb[7].mxu0 }
 0x11e   :  { %v2153_v8 = vadd.f32 %v2111_v38, %v673_v6  ;;  %v1650_v9 = vpop.f32.mrb[7].mxu1 }
 0x11f   :  { %v1243_v10 = vmul.f32 %v2150_v5, %v2150_v5 }
 0x120   :  { %v1244_v11 = vmul.f32 %v2153_v8, %v2153_v8 }
 0x121   :  { %v1272_v12 = vsel %vm1253_vm2, %v1243_v10, 0.0 }
 0x122   :  { %v1275_v13 = vsel %vm1253_vm2, %v1244_v11, 0.0  ;;  %1273 = vadd.xlane.f32.xlu0 %v1272_v12 }
 0x123   :  { %1276 = vadd.xlane.f32.xlu1 %v1275_v13 }
 0x124   :  { %v743_v14 = vpop.f32.mrb[8].mxu0 }
 0x125   :  { %v2162_v15 = vadd.f32 %v2111_v38, %v743_v14  ;;  %v813_v16 = vpop.f32.mrb[8].mxu1  ;;  %v1661_v17 = vpop.f32.mrb[9].mxu0 }
 0x126   :  { %v2165_v19 = vadd.f32 %v2111_v38, %v813_v16  ;;  %v1672_v20 = vpop.f32.mrb[9].mxu1 }
 0x127   :  { %v1245_v21 = vmul.f32 %v2162_v15, %v2162_v15 }
 0x128   :  { %v1246_v22 = vmul.f32 %v2165_v19, %v2165_v19 }
 0x129   :  { %v1278_v23 = vsel %vm1253_vm2, %v1245_v21, 0.0 }
 0x12a   :  { %v1281_v24 = vsel %vm1253_vm2, %v1246_v22, 0.0  ;;  %1279 = vadd.xlane.f32.xlu0 %v1278_v23 }
 0x12b   :  { %1282 = vadd.xlane.f32.xlu1 %v1281_v24 }
 0x12c   :  { %v883_v25 = vpop.f32.mrb[10].mxu0 }
 0x12d   :  { %v2174_v26 = vadd.f32 %v2111_v38, %v883_v25  ;;  %v953_v27 = vpop.f32.mrb[10].mxu1  ;;  %v1683_v28 = vpop.f32.mrb[11].mxu0 }
 0x12e   :  { %v2177_v29 = vadd.f32 %v2111_v38, %v953_v27  ;;  %v1694_v30 = vpop.f32.mrb[11].mxu1 }
 0x12f   :  { %v1247_v31 = vmul.f32 %v2174_v26, %v2174_v26 }
 0x130   :  { %v1248_v32 = vmul.f32 %v2177_v29, %v2177_v29 }
 0x131   :  { %v1284_v33 = vsel %vm1253_vm2, %v1247_v31, 0.0 }
 0x132   :  { %v1287_v34 = vsel %vm1253_vm2, %v1248_v32, 0.0  ;;  %1285 = vadd.xlane.f32.xlu0 %v1284_v33 }
 0x133   :  { %1288 = vadd.xlane.f32.xlu1 %v1287_v34 }
 0x134   :  { %v1023_v35 = vpop.f32.mrb[12].mxu0 }
 0x135   :  { %v2186_v36 = vadd.f32 %v2111_v38, %v1023_v35  ;;  %v1093_v37 = vpop.f32.mrb[12].mxu1  ;;  %v1705_v0 = vpop.f32.mrb[13].mxu0 }
 0x136   :  { %v2189_v40 = vadd.f32 %v2111_v38, %v1093_v37  ;;  %v1716_v41 = vpop.f32.mrb[13].mxu1 }
 0x137   :  { %v1249_v42 = vmul.f32 %v2186_v36, %v2186_v36 }
 0x138   :  { %v1250_v43 = vmul.f32 %v2189_v40, %v2189_v40 }
 0x139   :  { %v1290_v18 = vsel %vm1253_vm2, %v1249_v42, 0.0 }
 0x13a   :  { %v1293_v44 = vsel %vm1253_vm2, %v1250_v43, 0.0  ;;  %1291 = vadd.xlane.f32.xlu0 %v1290_v18 }
 0x13b   :  { %1294 = vadd.xlane.f32.xlu1 %v1293_v44 }
 0x13c   :  { %v1163_v45 = vpop.f32.mrb[14].mxu0 }
 0x13d   :  { %v2198_v47 = vadd.f32 %v2111_v38, %v1163_v45  ;;  %v1233_v48 = vpop.f32.mrb[14].mxu1  ;;  %v1727_v49 = vpop.f32.mrb[15].mxu0 }
 0x13e   :  { %v2201_v51 = vadd.f32 %v2111_v38, %v1233_v48  ;;  %v1738_v52 = vpop.f32.mrb[15].mxu1 }
 0x13f   :  { %v1251_v53 = vmul.f32 %v2198_v47, %v2198_v47 }
 0x140   :  { %v1252_v54 = vmul.f32 %v2201_v51, %v2201_v51 }
 0x141   :  { %v1296_v55 = vsel %vm1253_vm2, %v1251_v53, 0.0 }
 0x142   :  { %v1299_v57 = vsel %vm1253_vm2, %v1252_v54, 0.0  ;;  %1297 = vadd.xlane.f32.xlu0 %v1296_v55 }
 0x143   :  { %1300 = vadd.xlane.f32.xlu1 %v1299_v57 }
 0x197   :  { %v1256_v58 = vpop.xlane.xlu0 %1255 }
 0x198   :  { %v1303_v59 = vmul.f32 0.03125, %v1256_v58 }
 0x19a   :  { %v1319_v61 = vadd.f32 1e-08, %v1303_v59 }
 0x19b   :  { %v1259_v62 = vpop.xlane.xlu0 %1258 }
 0x19c   :  { %1845 = vrsqrt.f32 %v1319_v61  ;;  %v1304_v38 = vmul.f32 0.03125, %v1259_v62 }
 0x19e   :  { %v1320_v63 = vadd.f32 1e-08, %v1304_v38 }
 0x19f   :  { %v1262_v2 = vpop.xlane.xlu1 %1261 }
 0x1a0   :  { %1847 = vrsqrt.f32 %v1320_v63  ;;  %v1305_v3 = vmul.f32 0.03125, %v1262_v2 }
 0x1a2   :  { %v1321_v4 = vadd.f32 1e-08, %v1305_v3 }
 0x1a3   :  { %v1265_v6 = vpop.xlane.xlu1 %1264 }
 0x1a4   :  { %1849 = vrsqrt.f32 %v1321_v4  ;;  %v1306_v7 = vmul.f32 0.03125, %v1265_v6 }
 0x1a6   :  { %v1846_v9 = vpop.eup %1845  ;;  %v1322_v10 = vadd.f32 1e-08, %v1306_v7 }
 0x1a7   :  { %v1351_v11 = vmul.f32 %v1846_v9, %v2114_v39  ;;  %v1268_v12 = vpop.xlane.xlu0 %1267 }
 0x1a8   :  { %1851 = vrsqrt.f32 %v1322_v10  ;;  %v1271_v13 = vpop.xlane.xlu1 %1270  ;;  %v1307_v14 = vmul.f32 0.03125, %v1268_v12 }
 0x1a9   :  { %vm1367_vm3 = vcmp.ge.f32.partialorder %v1351_v11, 0.0  ;;  %v1383_v16 = vmul.f32 0.1, %v1351_v11  ;;  %v1308_v17 = vmul.f32 0.03125, %v1271_v13 }
 0x1aa   :  { %v1848_v20 = vpop.eup %1847  ;;  %v1323_v21 = vadd.f32 1e-08, %v1307_v14 }
 0x1ab   :  { %v1399_v22 = vsel %vm1367_vm3, %v1351_v11, %v1383_v16  ;;  %v1352_v23 = vmul.f32 %v1848_v20, %v2117_v1  ;;  %v1324_v24 = vadd.f32 1e-08, %v1308_v17 }
 0x1ac   :  { %v1415_v25 = vpack.c.bf16 %v1399_v22, %v1399_v22  ;;  %1853 = vrsqrt.f32 %v1323_v21 }
 0x1ad   :  { %vm1368_vm5 = vcmp.ge.f32.partialorder %v1352_v23, 0.0  ;;  %v1384_v27 = vmul.f32 0.1, %v1352_v23  ;;  %1855 = vrsqrt.f32 %v1324_v24 }
 0x1ae   :  { %v1850_v39 = vpop.eup %1849  ;;  %1432 = vst.msk [vmem:[#allocation7] sm:$0x1] %vm1431_vm4, %v1415_v25 }
 0x1af   :  { %v1400_v28 = vsel %vm1368_vm5, %v1352_v23, %v1384_v27  ;;  %v1353_v30 = vmul.f32 %v1850_v39, %v2125_v46  ;;  %v1274_v31 = vpop.xlane.xlu0 %1273 }
 0x1b0   :  { %v1416_v32 = vpack.c.bf16 %v1400_v28, %v1400_v28  ;;  %v1277_v33 = vpop.xlane.xlu1 %1276  ;;  %v1309_v34 = vmul.f32 0.03125, %v1274_v31 }
 0x1b1   :  { %vm1369_vm6 = vcmp.ge.f32.partialorder %v1353_v30, 0.0  ;;  %v1385_v35 = vmul.f32 0.1, %v1353_v30  ;;  %v1310_v37 = vmul.f32 0.03125, %v1277_v33 }
 0x1b2   :  { %v1852_v1 = vpop.eup %1851  ;;  %1433 = vst.msk [vmem:[#allocation7 + $0x1] sm:$0x1] %vm1431_vm4, %v1416_v32  ;;  %v1325_v0 = vadd.f32 1e-08, %v1309_v34 }
 0x1b3   :  { %v1401_v41 = vsel %vm1369_vm6, %v1353_v30, %v1385_v35  ;;  %v1354_v42 = vmul.f32 %v1852_v1, %v2129_v50  ;;  %v1326_v43 = vadd.f32 1e-08, %v1310_v37 }
 0x1b4   :  { %v1417_v18 = vpack.c.bf16 %v1401_v41, %v1401_v41  ;;  %1857 = vrsqrt.f32 %v1325_v0 }
 0x1b5   :  { %vm1370_vm7 = vcmp.ge.f32.partialorder %v1354_v42, 0.0  ;;  %v1386_v44 = vmul.f32 0.1, %v1354_v42  ;;  %1859 = vrsqrt.f32 %v1326_v43 }
 0x1b6   :  { %v1854_v46 = vpop.eup %1853  ;;  %1434 = vst.msk [vmem:[#allocation7 + $0x2] sm:$0x1] %vm1431_vm4, %v1417_v18 }
 0x1b7   :  { %v1856_v45 = vpop.eup %1855  ;;  %v1402_v48 = vsel %vm1370_vm7, %v1354_v42, %v1386_v44  ;;  %v1355_v49 = vmul.f32 %v1854_v46, %v2137_v56  ;;  %v1280_v52 = vpop.xlane.xlu0 %1279 }
 0x1b8   :  { %v1418_v53 = vpack.c.bf16 %v1402_v48, %v1402_v48  ;;  %v1356_v54 = vmul.f32 %v1856_v45, %v2141_v60  ;;  %v1283_v55 = vpop.xlane.xlu1 %1282  ;;  %v1311_v57 = vmul.f32 0.03125, %v1280_v52 }
 0x1b9   :  { %vm1371_vm8 = vcmp.ge.f32.partialorder %v1355_v49, 0.0  ;;  %v1387_v50 = vmul.f32 0.1, %v1355_v49  ;;  %v1312_v58 = vmul.f32 0.03125, %v1283_v55 }
 0x1ba   :  { %1435 = vst.msk [vmem:[#allocation7 + $0x3] sm:$0x1] %vm1431_vm4, %v1418_v53  ;;  %vm1372_vm9 = vcmp.ge.f32.partialorder %v1356_v54, 0.0  ;;  %v1388_v59 = vmul.f32 0.1, %v1356_v54 }
 0x1bb   :  { %v1327_v61 = vadd.f32 1e-08, %v1311_v57  ;;  %v1403_v62 = vsel %vm1371_vm8, %v1355_v49, %v1387_v50  ;;  %v1328_v38 = vadd.f32 1e-08, %v1312_v58 }
 0x1bc   :  { %v1404_v63 = vsel %vm1372_vm9, %v1356_v54, %v1388_v59  ;;  %v1419_v2 = vpack.c.bf16 %v1403_v62, %v1403_v62 }
 0x1bd   :  { %1861 = vrsqrt.f32 %v1327_v61  ;;  %v1420_v56 = vpack.c.bf16 %v1404_v63, %v1404_v63 }
 0x1be   :  { %1863 = vrsqrt.f32 %v1328_v38  ;;  %v1858_v3 = vpop.eup %1857  ;;  %1436 = vst.msk [vmem:[#allocation7 + $0x4] sm:$0x1] %vm1431_vm4, %v1419_v2 }
 0x1bf   :  { %v1860_v60 = vpop.eup %1859  ;;  %1437 = vst.msk [vmem:[#allocation7 + $0x5] sm:$0x1] %vm1431_vm4, %v1420_v56  ;;  %v1357_v4 = vmul.f32 %v1858_v3, %v2150_v5  ;;  %v1286_v6 = vpop.xlane.xlu0 %1285 }
 0x1c0   :  { %v1358_v7 = vmul.f32 %v1860_v60, %v2153_v8  ;;  %v1289_v9 = vpop.xlane.xlu1 %1288  ;;  %v1313_v10 = vmul.f32 0.03125, %v1286_v6 }
 0x1c1   :  { %vm1373_vm10 = vcmp.ge.f32.partialorder %v1357_v4, 0.0  ;;  %v1389_v11 = vmul.f32 0.1, %v1357_v4  ;;  %v1314_v12 = vmul.f32 0.03125, %v1289_v9 }
 0x1c2   :  { %vm1374_vm11 = vcmp.ge.f32.partialorder %v1358_v7, 0.0  ;;  %v1390_v13 = vmul.f32 0.1, %v1358_v7  ;;  %v1329_v14 = vadd.f32 1e-08, %v1313_v10 }
 0x1c3   :  { %v1405_v16 = vsel %vm1373_vm10, %v1357_v4, %v1389_v11  ;;  %v1330_v17 = vadd.f32 1e-08, %v1314_v12 }
 0x1c4   :  { %v1406_v20 = vsel %vm1374_vm11, %v1358_v7, %v1390_v13  ;;  %v1421_v21 = vpack.c.bf16 %v1405_v16, %v1405_v16  ;;  %1865 = vrsqrt.f32 %v1329_v14 }
 0x1c5   :  { %v1422_v22 = vpack.c.bf16 %v1406_v20, %v1406_v20  ;;  %1867 = vrsqrt.f32 %v1330_v17 }
 0x1c6   :  { %1438 = vst.msk [vmem:[#allocation7 + $0x6] sm:$0x1] %vm1431_vm4, %v1421_v21 }
 0x1c7   :  { %v1862_v23 = vpop.eup %1861  ;;  %1439 = vst.msk [vmem:[#allocation7 + $0x7] sm:$0x1] %vm1431_vm4, %v1422_v22  ;;  %v1292_v24 = vpop.xlane.xlu0 %1291 }
 0x1c8   :  { %v1864_v5 = vpop.eup %1863  ;;  %v1359_v8 = vmul.f32 %v1862_v23, %v2162_v15  ;;  %v1295_v27 = vpop.xlane.xlu1 %1294  ;;  %v1315_v39 = vmul.f32 0.03125, %v1292_v24 }
 0x1c9   :  { %v1360_v25 = vmul.f32 %v1864_v5, %v2165_v19  ;;  %v1316_v30 = vmul.f32 0.03125, %v1295_v27 }
 0x1ca   :  { %vm1375_vm12 = vcmp.ge.f32.partialorder %v1359_v8, 0.0  ;;  %v1391_v28 = vmul.f32 0.1, %v1359_v8  ;;  %v1331_v32 = vadd.f32 1e-08, %v1315_v39 }
 0x1cb   :  { %vm1376_vm13 = vcmp.ge.f32.partialorder %v1360_v25, 0.0  ;;  %v1392_v31 = vmul.f32 0.1, %v1360_v25  ;;  %v1332_v34 = vadd.f32 1e-08, %v1316_v30 }
 0x1cc   :  { %v1407_v33 = vsel %vm1375_vm12, %v1359_v8, %v1391_v28  ;;  %1869 = vrsqrt.f32 %v1331_v32 }
 0x1cd   :  { %v1408_v35 = vsel %vm1376_vm13, %v1360_v25, %v1392_v31  ;;  %v1423_v37 = vpack.c.bf16 %v1407_v33, %v1407_v33  ;;  %1871 = vrsqrt.f32 %v1332_v34 }
 0x1ce   :  { %v1424_v1 = vpack.c.bf16 %v1408_v35, %v1408_v35  ;;  %v1866_v0 = vpop.eup %1865 }
 0x1cf   :  { %1440 = vst.msk [vmem:[#allocation7 + $0x8] sm:$0x1] %vm1431_vm4, %v1423_v37  ;;  %v1868_v15 = vpop.eup %1867  ;;  %v1361_v19 = vmul.f32 %v1866_v0, %v2174_v26  ;;  %v1298_v41 = vpop.xlane.xlu0 %1297 }
 0x1d0   :  { %1441 = vst.msk [vmem:[#allocation7 + $0x9] sm:$0x1] %vm1431_vm4, %v1424_v1  ;;  %v1362_v42 = vmul.f32 %v1868_v15, %v2177_v29  ;;  %v1301_v43 = vpop.xlane.xlu1 %1300  ;;  %v1317_v18 = vmul.f32 0.03125, %v1298_v41 }
 0x1d1   :  { %vm1377_vm14 = vcmp.ge.f32.partialorder %v1361_v19, 0.0  ;;  %v1393_v44 = vmul.f32 0.1, %v1361_v19  ;;  %v1318_v46 = vmul.f32 0.03125, %v1301_v43 }
 0x1d2   :  { %vm1378_vm15 = vcmp.ge.f32.partialorder %v1362_v42, 0.0  ;;  %v1394_v45 = vmul.f32 0.1, %v1362_v42  ;;  %v1333_v48 = vadd.f32 1e-08, %v1317_v18 }
 0x1d3   :  { %v1409_v49 = vsel %vm1377_vm14, %v1361_v19, %v1393_v44  ;;  %v1334_v52 = vadd.f32 1e-08, %v1318_v46 }
 0x1d4   :  { %v1410_v53 = vsel %vm1378_vm15, %v1362_v42, %v1394_v45  ;;  %v1425_v54 = vpack.c.bf16 %v1409_v49, %v1409_v49  ;;  %1873 = vrsqrt.f32 %v1333_v48 }
 0x1d5   :  { %v1426_v55 = vpack.c.bf16 %v1410_v53, %v1410_v53  ;;  %1875 = vrsqrt.f32 %v1334_v52 }
 0x1d6   :  { %v1870_v57 = vpop.eup %1869  ;;  %1442 = vst.msk [vmem:[#allocation7 + $0xa] sm:$0x1] %vm1431_vm4, %v1425_v54 }
 0x1d7   :  { %v1872_v26 = vpop.eup %1871  ;;  %1443 = vst.msk [vmem:[#allocation7 + $0xb] sm:$0x1] %vm1431_vm4, %v1426_v55  ;;  %v1363_v29 = vmul.f32 %v1870_v57, %v2186_v36 }
 0x1d8   :  { %v1364_v50 = vmul.f32 %v1872_v26, %v2189_v40 }
 0x1d9   :  { %vm1379_vm0 = vcmp.ge.f32.partialorder %v1363_v29, 0.0  ;;  %v1395_v58 = vmul.f32 0.1, %v1363_v29 }
 0x1da   :  { %vm1380_vm1 = vcmp.ge.f32.partialorder %v1364_v50, 0.0  ;;  %v1396_v59 = vmul.f32 0.1, %v1364_v50 }
 0x1db   :  { %v1411_v61 = vsel %vm1379_vm0, %v1363_v29, %v1395_v58 }
 0x1dc   :  { %v1412_v62 = vsel %vm1380_vm1, %v1364_v50, %v1396_v59  ;;  %v1427_v38 = vpack.c.bf16 %v1411_v61, %v1411_v61 }
 0x1dd   :  { %v1428_v63 = vpack.c.bf16 %v1412_v62, %v1412_v62 }
 0x1de   :  { %v1874_v2 = vpop.eup %1873  ;;  %1444 = vst.msk [vmem:[#allocation7 + $0xc] sm:$0x1] %vm1431_vm4, %v1427_v38 }
 0x1df   :  { %v1876_v56 = vpop.eup %1875  ;;  %1445 = vst.msk [vmem:[#allocation7 + $0xd] sm:$0x1] %vm1431_vm4, %v1428_v63  ;;  %v1365_v3 = vmul.f32 %v1874_v2, %v2198_v47 }
 0x1e0   :  { %v1366_v36 = vmul.f32 %v1876_v56, %v2201_v51 }
 0x1e1   :  { %vm1381_vm2 = vcmp.ge.f32.partialorder %v1365_v3, 0.0  ;;  %v1397_v40 = vmul.f32 0.1, %v1365_v3 }
 0x1e2   :  { %vm1382_vm3 = vcmp.ge.f32.partialorder %v1366_v36, 0.0  ;;  %v1398_v60 = vmul.f32 0.1, %v1366_v36 }
 0x1e3   :  { %v1413_v4 = vsel %vm1381_vm2, %v1365_v3, %v1397_v40 }
 0x1e4   :  { %v1414_v6 = vsel %vm1382_vm3, %v1366_v36, %v1398_v60  ;;  %v1429_v7 = vpack.c.bf16 %v1413_v4, %v1413_v4 }
 0x1e5   :  { %v1430_v9 = vpack.c.bf16 %v1414_v6, %v1414_v6 }
 0x1e6   :  { %1446 = vst.msk [vmem:[#allocation7 + $0xe] sm:$0x1] %vm1431_vm4, %v1429_v7 }
 0x1e7   :  { %1447 = vst.msk [vmem:[#allocation7 + $0xf] sm:$0x1] %vm1431_vm4, %v1430_v9 }
 0x1e8   :  { %1932 = shalt.err (!%p1929_p6)
}
 0x1e9   :  { %s1933_s15 = scalar_lea.hbm %s2256_s3, 256 }
 0x1ea   :  { %p1934_p7 = scmp.ne.s32.totalorder %s2256_s3, %s1933_s15  ;;  %p1937_p8 = scmp.lt.u32.totalorder %s1933_s15, %s2256_s3 }
 0x1ec   :  { %p1939_p9 = pnand %p1937_p8, %p1934_p7 }
 0x1ee   :  { %1942 = shalt.err (!%p1939_p9)
}
 0x1ef   :  { %s1957_s20 = smov 16   ;;  %s1958_s21 = smov 1  }
 0x1f0   :  { %1459 = dma.vmem_to_hbm [thread:$0]  %s1454_s11, 256, %s2256_s3, [#allocation4], %s1957_s20, %s1957_s20, %s1958_s21  }
 0x1f1   :  { %1947 = dma.done.wait [#allocation4], 256  }
 0x1f2   :  { %1948 = vsyncadd [#allocation4], 4294967040 }
 0x1f3   :  { %1463 = vsyncpa [#allocation3], 1 }
 0x1f4   :  { %1464 = vsyncpa [#allocation6], 1 }
 0x1f5   :  { %1465 = vsyncpa [#allocation4], 1 }

</bundles_post_ra>
